<compile_context>
chip_gen: v6e
topology: v6e:2x2x1
jax: 0.10.0
libtpu: 0.0.40
codegen_flags: <defaults>
</compile_context>

<pallas_src>
import functools

import jax
import jax.numpy as jnp
from jax.experimental import pallas as pl
from jax.experimental.pallas import tpu as pltpu


def _gru_text_encoder_kernel(emb_ref,    # (1, slen*Bb, E) per-block, time-major, flattened
                             wih_ref,    # (E, 3H)  W_ih^T   (gate order r, z, n)
                             whh_ref,    # (H, 3H)  W_hh^T
                             bias_ref,   # (1, 3H)  b_ih + [b_hr, b_hz, 0]
                             bhhn_ref,   # (1, H)   b_hn (stays inside r * (.))
                             feat_ref,   # (1, slen*Bb, H)  h_t per (step, batch-row)
                             *, slen, batch_block):
    Bb = batch_block
    H = whh_ref.shape[0]

    # ---- one-shot input projection for every (timestep, batch-row) in this block ----
    xW = jnp.dot(emb_ref[0], wih_ref[...], preferred_element_type=jnp.float32)
    xW = xW + bias_ref[...].astype(jnp.float32)        # broadcast add, hoisted out of time loop

    whh = whh_ref[...]                                 # (H, 3H), loop-invariant
    bhh_n = bhhn_ref[...].astype(jnp.float32)          # (1, H)

    # ---- t = 0: h_{-1} == 0 -> recurrent matmul is identically zero, skip it ----
    r = jax.nn.sigmoid(xW[0:Bb, :H])
    z = jax.nn.sigmoid(xW[0:Bb, H:2 * H])
    n = jnp.tanh(xW[0:Bb, 2 * H:] + r * bhh_n)
    h = (1.0 - z) * n
    feat_ref[0, pl.ds(0, Bb), :] = h.astype(feat_ref.dtype)

    # ---- t >= 1: serial recurrence, fully unrolled (slen is small & static) ----
    # One fused (Bb, H) @ (H, 3H) MXU matmul per step.
    for t in range(1, slen):
        r0 = t * Bb                                     # static row offset
        gW = jnp.dot(h.astype(whh.dtype), whh, preferred_element_type=jnp.float32)
        r = jax.nn.sigmoid(xW[r0:r0 + Bb, :H] + gW[:, :H])
        z = jax.nn.sigmoid(xW[r0:r0 + Bb, H:2 * H] + gW[:, H:2 * H])
        n = jnp.tanh(xW[r0:r0 + Bb, 2 * H:] + r * (gW[:, 2 * H:] + bhh_n))
        h = (1.0 - z) * n + z * h
        feat_ref[0, pl.ds(r0, Bb), :] = h.astype(feat_ref.dtype)


def text_encoder_forward(input_inds, input_lens, params, *,
                         batch_block=None, use_bf16=False):
    emb_table, w_ih, w_hh, b_ih, b_hh = params
    bsize, slen = input_inds.shape
    E = emb_table.shape[1]
    H = w_hh.shape[1]

    # NOTE: size batch_block against VMEM (v7x has 64 MiB, half of v5e/v6e).
    if batch_block is None or bsize % batch_block != 0:
        batch_block = bsize
    nb = bsize // batch_block
    compute_dtype = jnp.bfloat16 if use_bf16 else jnp.float32

    # ---------------- plain-JAX glue (fused by XLA; keeps kernel I/O minimal) ----------------
    lens = input_lens.astype(jnp.int32)
    mask = (jnp.arange(slen)[None, :] < lens[:, None]).astype(jnp.float32)     # (bsize, slen)

    emb = jnp.take(emb_table, input_inds, axis=0).astype(jnp.float32)          # (bsize, slen, E)
    emb_out = emb * mask[:, :, None]                                           # zero padded steps

    # per-block, time-major, flattened layout: row t*Bb + i  <->  (batch g*Bb+i, time t)
    emb_blocks = (emb.reshape(nb, batch_block, slen, E)
                     .transpose(0, 2, 1, 3)
                     .reshape(nb, slen * batch_block, E)
                     .astype(compute_dtype))

    wih_t = jnp.asarray(w_ih, jnp.float32).T.astype(compute_dtype)             # (E, 3H)
    whh_t = jnp.asarray(w_hh, jnp.float32).T.astype(compute_dtype)             # (H, 3H)
    b_ih = jnp.asarray(b_ih, jnp.float32)
    b_hh = jnp.asarray(b_hh, jnp.float32)
    # Fold the recurrent r/z biases into the input-side bias (PyTorch GRU keeps
    # only b_hn inside r*(.)):
    bias_eff = (b_ih + jnp.concatenate([b_hh[:2 * H], jnp.zeros((H,), jnp.float32)])
                ).reshape(1, 3 * H)
    bhh_n = b_hh[2 * H:].reshape(1, H)

    kernel = functools.partial(_gru_text_encoder_kernel,
                               slen=slen, batch_block=batch_block)

    grid_spec = pltpu.PrefetchScalarGridSpec(
        num_scalar_prefetch=0,
        grid=(nb,),
        in_specs=[
            pl.BlockSpec((1, slen * batch_block, E), lambda b: (b, 0, 0)),
            pl.BlockSpec((E, 3 * H), lambda b: (0, 0)),
            pl.BlockSpec((H, 3 * H), lambda b: (0, 0)),
            pl.BlockSpec((1, 3 * H), lambda b: (0, 0)),
            pl.BlockSpec((1, H), lambda b: (0, 0)),
        ],
        out_specs=pl.BlockSpec((1, slen * batch_block, H), lambda b: (b, 0, 0)),
    )

    feats_blocks = pl.pallas_call(
        kernel,
        out_shape=jax.ShapeDtypeStruct((nb, slen * batch_block, H), jnp.float32),
        grid_spec=grid_spec,
        compiler_params=pltpu.CompilerParams(
            dimension_semantics=("parallel",)),   # independent batch blocks (v7x: 2 TCs)
    )(emb_blocks, wih_t, whh_t, bias_eff, bhh_n)

    # un-flatten back to (bsize, slen, H), apply the length mask, gather final hidden
    feats = (feats_blocks.reshape(nb, slen, batch_block, H)
                         .transpose(0, 2, 1, 3)
                         .reshape(bsize, slen, H))
    feats = feats * mask[:, :, None]                                           # zero padded steps

    last = jnp.maximum(lens - 1, 0)
    hiddens = feats_blocks.reshape(nb, slen, batch_block, H).transpose(0, 2, 1, 3) \
                          .reshape(bsize, slen, H)[jnp.arange(bsize), last, :][None]  # (1, bsize, H)

    return emb_out, feats, mask, hiddens


def _reference_forward(input_inds, input_lens, params):
    # pure-jnp reference (same math, no Pallas) for the correctness check
    emb_table, w_ih, w_hh, b_ih, b_hh = params
    bsize, slen = input_inds.shape
    H = w_hh.shape[1]
    emb = jnp.take(emb_table, input_inds, axis=0).astype(jnp.float32)
    mask = (jnp.arange(slen)[None, :] < input_lens[:, None]).astype(jnp.float32)
    emb_out = emb * mask[:, :, None]

    def cell(h, x):
        gx = x @ w_ih.T + b_ih
        gh = h @ w_hh.T + b_hh
        r = jax.nn.sigmoid(gx[:, :H] + gh[:, :H])
        z = jax.nn.sigmoid(gx[:, H:2 * H] + gh[:, H:2 * H])
        n = jnp.tanh(gx[:, 2 * H:] + r * gh[:, 2 * H:])
        return (1.0 - z) * n + z * h

    feats = []
    h = jnp.zeros((bsize, H), jnp.float32)
    h_final = jnp.zeros((bsize, H), jnp.float32)
    for t in range(slen):
        h = cell(h, emb[:, t, :])
        v = mask[:, t:t + 1]
        feats.append(v * h)
        h_final = v * h + (1.0 - v) * h_final
    feats = jnp.stack(feats, axis=1)
    return emb_out, feats, mask, h_final[None]


if __name__ == "__main__":
    key = jax.random.PRNGKey(0)
    vocab, E, H = 50, 32, 32

    def make_params(key):
        k1, k2, k3 = jax.random.split(key, 3)
        emb_table = jax.random.normal(k1, (vocab, E), jnp.float32) * 0.1
        bound_ih = (6.0 / (3 * H + E)) ** 0.5
        bound_hh = (6.0 / (3 * H + H)) ** 0.5
        w_ih = jax.random.uniform(k2, (3 * H, E), jnp.float32, -bound_ih, bound_ih)
        w_hh = jax.random.uniform(k3, (3 * H, H), jnp.float32, -bound_hh, bound_hh)
        b_ih = jnp.zeros((3 * H,), jnp.float32)
        b_hh = jnp.zeros((3 * H,), jnp.float32)
        return (emb_table, w_ih, w_hh, b_ih, b_hh)

    kp, kd1, kd2 = jax.random.split(key, 3)
    params = make_params(kp)

    # ---- test 1: bsize=2, slen=8, single batch block (grid = 1) ----
    bsize, slen = 2, 8
    input_inds = jax.random.randint(kd1, (bsize, slen), 0, vocab, jnp.int32)
    input_lens = jnp.array([5, 8], jnp.int32)

    ref = _reference_forward(input_inds, input_lens, params)
    fwd = jax.jit(functools.partial(text_encoder_forward, use_bf16=False))
    outs = jax.block_until_ready(fwd(input_inds, input_lens, params))
    emb_out, feats, masks, hiddens = outs
    assert emb_out.shape == (bsize, slen, E)
    assert feats.shape == (bsize, slen, H)
    assert masks.shape == (bsize, slen)
    assert hiddens.shape == (1, bsize, H)
    for got, want in zip(outs, ref):
        assert jnp.allclose(got, want, atol=1e-5, rtol=1e-5)

    # bf16 MXU path (v5e/v6e friendly): f32 accumulation, looser tolerance
    fwd_bf16 = jax.jit(functools.partial(text_encoder_forward, use_bf16=True))
    outs_bf16 = jax.block_until_ready(fwd_bf16(input_inds, input_lens, params))
    for got, want in zip(outs_bf16, ref):
        assert jnp.allclose(got, want, atol=3e-2, rtol=3e-2)

    # ---- test 2: bsize=8 split into 2 batch blocks (exercises the parallel grid axis) ----
    bsize2 = 8
    input_inds2 = jax.random.randint(kd2, (bsize2, slen), 0, vocab, jnp.int32)
    input_lens2 = jnp.array([1, 2, 3, 4, 5, 6, 7, 8], jnp.int32)
    ref2 = _reference_forward(input_inds2, input_lens2, params)
    fwd2 = jax.jit(functools.partial(text_encoder_forward, batch_block=4, use_bf16=False))
    outs2 = jax.block_until_ready(fwd2(input_inds2, input_lens2, params))
    for got, want in zip(outs2, ref2):
        assert jnp.allclose(got, want, atol=1e-5, rtol=1e-5)

    print("KERNEL_OK")
</pallas_src>

<mosaic_0001>
module attributes {stable_mosaic.version = 11 : i64} {
  func.func @_gru_text_encoder_kernel(%arg0: i32, %arg1: memref<1x16x32xf32, #tpu.memory_space<vmem>>, %arg2: memref<32x96xf32, #tpu.memory_space<vmem>>, %arg3: memref<32x96xf32, #tpu.memory_space<vmem>>, %arg4: memref<1x96xf32, #tpu.memory_space<vmem>>, %arg5: memref<1x32xf32, #tpu.memory_space<vmem>>, %arg6: memref<1x16x32xf32, #tpu.memory_space<vmem>>) attributes {dimension_semantics = [#tpu.dimension_semantics<parallel>], iteration_bounds = array<i64: 1>, scalar_prefetch = 0 : i64, scratch_operands = 0 : i64, tpu.core_type = #tpu.core_type<tc>, window_params = [{transform_indices = @transform_0, window_bounds = array<i64: 1, 16, 32>}, {pipeline_mode = #tpu.pipeline_mode<synchronous>, transform_indices = @transform_1, window_bounds = array<i64: 32, 96>}, {pipeline_mode = #tpu.pipeline_mode<synchronous>, transform_indices = @transform_2, window_bounds = array<i64: 32, 96>}, {pipeline_mode = #tpu.pipeline_mode<synchronous>, transform_indices = @transform_3, window_bounds = array<i64: 1, 96>}, {pipeline_mode = #tpu.pipeline_mode<synchronous>, transform_indices = @transform_4, window_bounds = array<i64: 1, 32>}, {transform_indices = @transform_5, window_bounds = array<i64: 1, 16, 32>}]} {
    %c0 = arith.constant 0 : index
    %c0_0 = arith.constant 0 : index
    %c0_1 = arith.constant 0 : index
    %0 = vector.load %arg1[%c0, %c0_0, %c0_1] : memref<1x16x32xf32, #tpu.memory_space<vmem>>, vector<1x16x32xf32>
    %1 = vector.shape_cast %0 : vector<1x16x32xf32> to vector<16x32xf32>
    %c0_2 = arith.constant 0 : index
    %c0_3 = arith.constant 0 : index
    %2 = vector.load %arg2[%c0_2, %c0_3] : memref<32x96xf32, #tpu.memory_space<vmem>>, vector<32x96xf32>
    %cst = arith.constant dense<0.000000e+00> : vector<16x96xf32>
    %3 = tpu.matmul %1, %2, %cst {dimension_numbers = #tpu.dot_dimension_numbers<[1], [0], [0], [1], [0, 0, 1, 1], [], []>} : vector<16x32xf32>, vector<32x96xf32>, vector<16x96xf32> -> vector<16x96xf32>
    %c0_4 = arith.constant 0 : index
    %c0_5 = arith.constant 0 : index
    %4 = vector.load %arg4[%c0_4, %c0_5] : memref<1x96xf32, #tpu.memory_space<vmem>>, vector<1x96xf32>
    %5 = vector.broadcast %4 : vector<1x96xf32> to vector<16x96xf32>
    %6 = arith.addf %3, %5 : vector<16x96xf32>
    %c0_6 = arith.constant 0 : index
    %c0_7 = arith.constant 0 : index
    %7 = vector.load %arg3[%c0_6, %c0_7] : memref<32x96xf32, #tpu.memory_space<vmem>>, vector<32x96xf32>
    %c0_8 = arith.constant 0 : index
    %c0_9 = arith.constant 0 : index
    %8 = vector.load %arg5[%c0_8, %c0_9] : memref<1x32xf32, #tpu.memory_space<vmem>>, vector<1x32xf32>
    %9 = vector.extract_strided_slice %6 {offsets = [0, 0], sizes = [2, 32], strides = [1, 1]} : vector<16x96xf32> to vector<2x32xf32>
    %10 = arith.negf %9 : vector<2x32xf32>
    %11 = math.exp %10 : vector<2x32xf32>
    %cst_10 = arith.constant 1.000000e+00 : f32
    %12 = vector.broadcast %cst_10 : f32 to vector<2x32xf32>
    %13 = arith.addf %12, %11 : vector<2x32xf32>
    %14 = arith.divf %12, %13 : vector<2x32xf32>
    %15 = vector.extract_strided_slice %6 {offsets = [0, 32], sizes = [2, 32], strides = [1, 1]} : vector<16x96xf32> to vector<2x32xf32>
    %16 = arith.negf %15 : vector<2x32xf32>
    %17 = math.exp %16 : vector<2x32xf32>
    %cst_11 = arith.constant 1.000000e+00 : f32
    %18 = vector.broadcast %cst_11 : f32 to vector<2x32xf32>
    %19 = arith.addf %18, %17 : vector<2x32xf32>
    %20 = arith.divf %18, %19 : vector<2x32xf32>
    %21 = vector.extract_strided_slice %6 {offsets = [0, 64], sizes = [2, 32], strides = [1, 1]} : vector<16x96xf32> to vector<2x32xf32>
    %22 = vector.broadcast %8 : vector<1x32xf32> to vector<2x32xf32>
    %23 = arith.mulf %14, %22 : vector<2x32xf32>
    %24 = arith.addf %21, %23 : vector<2x32xf32>
    %25 = math.tanh %24 : vector<2x32xf32>
    %cst_12 = arith.constant 1.000000e+00 : f32
    %26 = vector.broadcast %cst_12 : f32 to vector<2x32xf32>
    %27 = arith.subf %26, %20 : vector<2x32xf32>
    %28 = arith.mulf %27, %25 : vector<2x32xf32>
    %c0_13 = arith.constant 0 : index
    %c0_14 = arith.constant 0 : index
    %c0_15 = arith.constant 0 : index
    %29 = vector.load %arg6[%c0_13, %c0_14, %c0_15] : memref<1x16x32xf32, #tpu.memory_space<vmem>>, vector<1x2x32xf32>
    %30 = vector.shape_cast %29 : vector<1x2x32xf32> to vector<2x32xf32>
    %31 = vector.shape_cast %28 : vector<2x32xf32> to vector<1x2x32xf32>
    tpu.vector_store %arg6[%c0_13, %c0_14, %c0_15], %31 {strides = array<i32>} : memref<1x16x32xf32, #tpu.memory_space<vmem>>, vector<1x2x32xf32>,
    %cst_16 = arith.constant dense<0.000000e+00> : vector<2x96xf32>
    %32 = tpu.matmul %28, %7, %cst_16 {dimension_numbers = #tpu.dot_dimension_numbers<[1], [0], [0], [1], [0, 0, 1, 1], [], []>} : vector<2x32xf32>, vector<32x96xf32>, vector<2x96xf32> -> vector<2x96xf32>
    %33 = vector.extract_strided_slice %6 {offsets = [2, 0], sizes = [2, 32], strides = [1, 1]} : vector<16x96xf32> to vector<2x32xf32>
    %34 = vector.extract_strided_slice %32 {offsets = [0, 0], sizes = [2, 32], strides = [1, 1]} : vector<2x96xf32> to vector<2x32xf32>
    %35 = arith.addf %33, %34 : vector<2x32xf32>
    %36 = arith.negf %35 : vector<2x32xf32>
    %37 = math.exp %36 : vector<2x32xf32>
    %cst_17 = arith.constant 1.000000e+00 : f32
    %38 = vector.broadcast %cst_17 : f32 to vector<2x32xf32>
    %39 = arith.addf %38, %37 : vector<2x32xf32>
    %40 = arith.divf %38, %39 : vector<2x32xf32>
    %41 = vector.extract_strided_slice %6 {offsets = [2, 32], sizes = [2, 32], strides = [1, 1]} : vector<16x96xf32> to vector<2x32xf32>
    %42 = vector.extract_strided_slice %32 {offsets = [0, 32], sizes = [2, 32], strides = [1, 1]} : vector<2x96xf32> to vector<2x32xf32>
    %43 = arith.addf %41, %42 : vector<2x32xf32>
    %44 = arith.negf %43 : vector<2x32xf32>
    %45 = math.exp %44 : vector<2x32xf32>
    %cst_18 = arith.constant 1.000000e+00 : f32
    %46 = vector.broadcast %cst_18 : f32 to vector<2x32xf32>
    %47 = arith.addf %46, %45 : vector<2x32xf32>
    %48 = arith.divf %46, %47 : vector<2x32xf32>
    %49 = vector.extract_strided_slice %6 {offsets = [2, 64], sizes = [2, 32], strides = [1, 1]} : vector<16x96xf32> to vector<2x32xf32>
    %50 = vector.extract_strided_slice %32 {offsets = [0, 64], sizes = [2, 32], strides = [1, 1]} : vector<2x96xf32> to vector<2x32xf32>
    %51 = vector.broadcast %8 : vector<1x32xf32> to vector<2x32xf32>
    %52 = arith.addf %50, %51 : vector<2x32xf32>
    %53 = arith.mulf %40, %52 : vector<2x32xf32>
    %54 = arith.addf %49, %53 : vector<2x32xf32>
    %55 = math.tanh %54 : vector<2x32xf32>
    %cst_19 = arith.constant 1.000000e+00 : f32
    %56 = vector.broadcast %cst_19 : f32 to vector<2x32xf32>
    %57 = arith.subf %56, %48 : vector<2x32xf32>
    %58 = arith.mulf %57, %55 : vector<2x32xf32>
    %59 = arith.mulf %48, %28 : vector<2x32xf32>
    %60 = arith.addf %58, %59 : vector<2x32xf32>
    %c0_20 = arith.constant 0 : index
    %c2 = arith.constant 2 : index
    %c0_21 = arith.constant 0 : index
    %61 = vector.load %arg6[%c0_20, %c2, %c0_21] : memref<1x16x32xf32, #tpu.memory_space<vmem>>, vector<1x2x32xf32>
    %62 = vector.shape_cast %61 : vector<1x2x32xf32> to vector<2x32xf32>
    %63 = vector.shape_cast %60 : vector<2x32xf32> to vector<1x2x32xf32>
    tpu.vector_store %arg6[%c0_20, %c2, %c0_21], %63 {strides = array<i32>} : memref<1x16x32xf32, #tpu.memory_space<vmem>>, vector<1x2x32xf32>,
    %cst_22 = arith.constant dense<0.000000e+00> : vector<2x96xf32>
    %64 = tpu.matmul %60, %7, %cst_22 {dimension_numbers = #tpu.dot_dimension_numbers<[1], [0], [0], [1], [0, 0, 1, 1], [], []>} : vector<2x32xf32>, vector<32x96xf32>, vector<2x96xf32> -> vector<2x96xf32>
    %65 = vector.extract_strided_slice %6 {offsets = [4, 0], sizes = [2, 32], strides = [1, 1]} : vector<16x96xf32> to vector<2x32xf32>
    %66 = vector.extract_strided_slice %64 {offsets = [0, 0], sizes = [2, 32], strides = [1, 1]} : vector<2x96xf32> to vector<2x32xf32>
    %67 = arith.addf %65, %66 : vector<2x32xf32>
    %68 = arith.negf %67 : vector<2x32xf32>
    %69 = math.exp %68 : vector<2x32xf32>
    %cst_23 = arith.constant 1.000000e+00 : f32
    %70 = vector.broadcast %cst_23 : f32 to vector<2x32xf32>
    %71 = arith.addf %70, %69 : vector<2x32xf32>
    %72 = arith.divf %70, %71 : vector<2x32xf32>
    %73 = vector.extract_strided_slice %6 {offsets = [4, 32], sizes = [2, 32], strides = [1, 1]} : vector<16x96xf32> to vector<2x32xf32>
    %74 = vector.extract_strided_slice %64 {offsets = [0, 32], sizes = [2, 32], strides = [1, 1]} : vector<2x96xf32> to vector<2x32xf32>
    %75 = arith.addf %73, %74 : vector<2x32xf32>
    %76 = arith.negf %75 : vector<2x32xf32>
    %77 = math.exp %76 : vector<2x32xf32>
    %cst_24 = arith.constant 1.000000e+00 : f32
    %78 = vector.broadcast %cst_24 : f32 to vector<2x32xf32>
    %79 = arith.addf %78, %77 : vector<2x32xf32>
    %80 = arith.divf %78, %79 : vector<2x32xf32>
    %81 = vector.extract_strided_slice %6 {offsets = [4, 64], sizes = [2, 32], strides = [1, 1]} : vector<16x96xf32> to vector<2x32xf32>
    %82 = vector.extract_strided_slice %64 {offsets = [0, 64], sizes = [2, 32], strides = [1, 1]} : vector<2x96xf32> to vector<2x32xf32>
    %83 = vector.broadcast %8 : vector<1x32xf32> to vector<2x32xf32>
    %84 = arith.addf %82, %83 : vector<2x32xf32>
    %85 = arith.mulf %72, %84 : vector<2x32xf32>
    %86 = arith.addf %81, %85 : vector<2x32xf32>
    %87 = math.tanh %86 : vector<2x32xf32>
    %cst_25 = arith.constant 1.000000e+00 : f32
    %88 = vector.broadcast %cst_25 : f32 to vector<2x32xf32>
    %89 = arith.subf %88, %80 : vector<2x32xf32>
    %90 = arith.mulf %89, %87 : vector<2x32xf32>
    %91 = arith.mulf %80, %60 : vector<2x32xf32>
    %92 = arith.addf %90, %91 : vector<2x32xf32>
    %c0_26 = arith.constant 0 : index
    %c4 = arith.constant 4 : index
    %c0_27 = arith.constant 0 : index
    %93 = vector.load %arg6[%c0_26, %c4, %c0_27] : memref<1x16x32xf32, #tpu.memory_space<vmem>>, vector<1x2x32xf32>
    %94 = vector.shape_cast %93 : vector<1x2x32xf32> to vector<2x32xf32>
    %95 = vector.shape_cast %92 : vector<2x32xf32> to vector<1x2x32xf32>
    tpu.vector_store %arg6[%c0_26, %c4, %c0_27], %95 {strides = array<i32>} : memref<1x16x32xf32, #tpu.memory_space<vmem>>, vector<1x2x32xf32>,
    %cst_28 = arith.constant dense<0.000000e+00> : vector<2x96xf32>
    %96 = tpu.matmul %92, %7, %cst_28 {dimension_numbers = #tpu.dot_dimension_numbers<[1], [0], [0], [1], [0, 0, 1, 1], [], []>} : vector<2x32xf32>, vector<32x96xf32>, vector<2x96xf32> -> vector<2x96xf32>
    %97 = vector.extract_strided_slice %6 {offsets = [6, 0], sizes = [2, 32], strides = [1, 1]} : vector<16x96xf32> to vector<2x32xf32>
    %98 = vector.extract_strided_slice %96 {offsets = [0, 0], sizes = [2, 32], strides = [1, 1]} : vector<2x96xf32> to vector<2x32xf32>
    %99 = arith.addf %97, %98 : vector<2x32xf32>
    %100 = arith.negf %99 : vector<2x32xf32>
    %101 = math.exp %100 : vector<2x32xf32>
    %cst_29 = arith.constant 1.000000e+00 : f32
    %102 = vector.broadcast %cst_29 : f32 to vector<2x32xf32>
    %103 = arith.addf %102, %101 : vector<2x32xf32>
    %104 = arith.divf %102, %103 : vector<2x32xf32>
    %105 = vector.extract_strided_slice %6 {offsets = [6, 32], sizes = [2, 32], strides = [1, 1]} : vector<16x96xf32> to vector<2x32xf32>
    %106 = vector.extract_strided_slice %96 {offsets = [0, 32], sizes = [2, 32], strides = [1, 1]} : vector<2x96xf32> to vector<2x32xf32>
    %107 = arith.addf %105, %106 : vector<2x32xf32>
    %108 = arith.negf %107 : vector<2x32xf32>
    %109 = math.exp %108 : vector<2x32xf32>
    %cst_30 = arith.constant 1.000000e+00 : f32
    %110 = vector.broadcast %cst_30 : f32 to vector<2x32xf32>
    %111 = arith.addf %110, %109 : vector<2x32xf32>
    %112 = arith.divf %110, %111 : vector<2x32xf32>
    %113 = vector.extract_strided_slice %6 {offsets = [6, 64], sizes = [2, 32], strides = [1, 1]} : vector<16x96xf32> to vector<2x32xf32>
    %114 = vector.extract_strided_slice %96 {offsets = [0, 64], sizes = [2, 32], strides = [1, 1]} : vector<2x96xf32> to vector<2x32xf32>
    %115 = vector.broadcast %8 : vector<1x32xf32> to vector<2x32xf32>
    %116 = arith.addf %114, %115 : vector<2x32xf32>
    %117 = arith.mulf %104, %116 : vector<2x32xf32>
    %118 = arith.addf %113, %117 : vector<2x32xf32>
    %119 = math.tanh %118 : vector<2x32xf32>
    %cst_31 = arith.constant 1.000000e+00 : f32
    %120 = vector.broadcast %cst_31 : f32 to vector<2x32xf32>
    %121 = arith.subf %120, %112 : vector<2x32xf32>
    %122 = arith.mulf %121, %119 : vector<2x32xf32>
    %123 = arith.mulf %112, %92 : vector<2x32xf32>
    %124 = arith.addf %122, %123 : vector<2x32xf32>
    %c0_32 = arith.constant 0 : index
    %c6 = arith.constant 6 : index
    %c0_33 = arith.constant 0 : index
    %125 = vector.load %arg6[%c0_32, %c6, %c0_33] : memref<1x16x32xf32, #tpu.memory_space<vmem>>, vector<1x2x32xf32>
    %126 = vector.shape_cast %125 : vector<1x2x32xf32> to vector<2x32xf32>
    %127 = vector.shape_cast %124 : vector<2x32xf32> to vector<1x2x32xf32>
    tpu.vector_store %arg6[%c0_32, %c6, %c0_33], %127 {strides = array<i32>} : memref<1x16x32xf32, #tpu.memory_space<vmem>>, vector<1x2x32xf32>,
    %cst_34 = arith.constant dense<0.000000e+00> : vector<2x96xf32>
    %128 = tpu.matmul %124, %7, %cst_34 {dimension_numbers = #tpu.dot_dimension_numbers<[1], [0], [0], [1], [0, 0, 1, 1], [], []>} : vector<2x32xf32>, vector<32x96xf32>, vector<2x96xf32> -> vector<2x96xf32>
    %129 = vector.extract_strided_slice %6 {offsets = [8, 0], sizes = [2, 32], strides = [1, 1]} : vector<16x96xf32> to vector<2x32xf32>
    %130 = vector.extract_strided_slice %128 {offsets = [0, 0], sizes = [2, 32], strides = [1, 1]} : vector<2x96xf32> to vector<2x32xf32>
    %131 = arith.addf %129, %130 : vector<2x32xf32>
    %132 = arith.negf %131 : vector<2x32xf32>
    %133 = math.exp %132 : vector<2x32xf32>
    %cst_35 = arith.constant 1.000000e+00 : f32
    %134 = vector.broadcast %cst_35 : f32 to vector<2x32xf32>
    %135 = arith.addf %134, %133 : vector<2x32xf32>
    %136 = arith.divf %134, %135 : vector<2x32xf32>
    %137 = vector.extract_strided_slice %6 {offsets = [8, 32], sizes = [2, 32], strides = [1, 1]} : vector<16x96xf32> to vector<2x32xf32>
    %138 = vector.extract_strided_slice %128 {offsets = [0, 32], sizes = [2, 32], strides = [1, 1]} : vector<2x96xf32> to vector<2x32xf32>
    %139 = arith.addf %137, %138 : vector<2x32xf32>
    %140 = arith.negf %139 : vector<2x32xf32>
    %141 = math.exp %140 : vector<2x32xf32>
    %cst_36 = arith.constant 1.000000e+00 : f32
    %142 = vector.broadcast %cst_36 : f32 to vector<2x32xf32>
    %143 = arith.addf %142, %141 : vector<2x32xf32>
    %144 = arith.divf %142, %143 : vector<2x32xf32>
    %145 = vector.extract_strided_slice %6 {offsets = [8, 64], sizes = [2, 32], strides = [1, 1]} : vector<16x96xf32> to vector<2x32xf32>
    %146 = vector.extract_strided_slice %128 {offsets = [0, 64], sizes = [2, 32], strides = [1, 1]} : vector<2x96xf32> to vector<2x32xf32>
    %147 = vector.broadcast %8 : vector<1x32xf32> to vector<2x32xf32>
    %148 = arith.addf %146, %147 : vector<2x32xf32>
    %149 = arith.mulf %136, %148 : vector<2x32xf32>
    %150 = arith.addf %145, %149 : vector<2x32xf32>
    %151 = math.tanh %150 : vector<2x32xf32>
    %cst_37 = arith.constant 1.000000e+00 : f32
    %152 = vector.broadcast %cst_37 : f32 to vector<2x32xf32>
    %153 = arith.subf %152, %144 : vector<2x32xf32>
    %154 = arith.mulf %153, %151 : vector<2x32xf32>
    %155 = arith.mulf %144, %124 : vector<2x32xf32>
    %156 = arith.addf %154, %155 : vector<2x32xf32>
    %c0_38 = arith.constant 0 : index
    %c8 = arith.constant 8 : index
    %c0_39 = arith.constant 0 : index
    %157 = vector.load %arg6[%c0_38, %c8, %c0_39] : memref<1x16x32xf32, #tpu.memory_space<vmem>>, vector<1x2x32xf32>
    %158 = vector.shape_cast %157 : vector<1x2x32xf32> to vector<2x32xf32>
    %159 = vector.shape_cast %156 : vector<2x32xf32> to vector<1x2x32xf32>
    tpu.vector_store %arg6[%c0_38, %c8, %c0_39], %159 {strides = array<i32>} : memref<1x16x32xf32, #tpu.memory_space<vmem>>, vector<1x2x32xf32>,
    %cst_40 = arith.constant dense<0.000000e+00> : vector<2x96xf32>
    %160 = tpu.matmul %156, %7, %cst_40 {dimension_numbers = #tpu.dot_dimension_numbers<[1], [0], [0], [1], [0, 0, 1, 1], [], []>} : vector<2x32xf32>, vector<32x96xf32>, vector<2x96xf32> -> vector<2x96xf32>
    %161 = vector.extract_strided_slice %6 {offsets = [10, 0], sizes = [2, 32], strides = [1, 1]} : vector<16x96xf32> to vector<2x32xf32>
    %162 = vector.extract_strided_slice %160 {offsets = [0, 0], sizes = [2, 32], strides = [1, 1]} : vector<2x96xf32> to vector<2x32xf32>
    %163 = arith.addf %161, %162 : vector<2x32xf32>
    %164 = arith.negf %163 : vector<2x32xf32>
    %165 = math.exp %164 : vector<2x32xf32>
    %cst_41 = arith.constant 1.000000e+00 : f32
    %166 = vector.broadcast %cst_41 : f32 to vector<2x32xf32>
    %167 = arith.addf %166, %165 : vector<2x32xf32>
    %168 = arith.divf %166, %167 : vector<2x32xf32>
    %169 = vector.extract_strided_slice %6 {offsets = [10, 32], sizes = [2, 32], strides = [1, 1]} : vector<16x96xf32> to vector<2x32xf32>
    %170 = vector.extract_strided_slice %160 {offsets = [0, 32], sizes = [2, 32], strides = [1, 1]} : vector<2x96xf32> to vector<2x32xf32>
    %171 = arith.addf %169, %170 : vector<2x32xf32>
    %172 = arith.negf %171 : vector<2x32xf32>
    %173 = math.exp %172 : vector<2x32xf32>
    %cst_42 = arith.constant 1.000000e+00 : f32
    %174 = vector.broadcast %cst_42 : f32 to vector<2x32xf32>
    %175 = arith.addf %174, %173 : vector<2x32xf32>
    %176 = arith.divf %174, %175 : vector<2x32xf32>
    %177 = vector.extract_strided_slice %6 {offsets = [10, 64], sizes = [2, 32], strides = [1, 1]} : vector<16x96xf32> to vector<2x32xf32>
    %178 = vector.extract_strided_slice %160 {offsets = [0, 64], sizes = [2, 32], strides = [1, 1]} : vector<2x96xf32> to vector<2x32xf32>
    %179 = vector.broadcast %8 : vector<1x32xf32> to vector<2x32xf32>
    %180 = arith.addf %178, %179 : vector<2x32xf32>
    %181 = arith.mulf %168, %180 : vector<2x32xf32>
    %182 = arith.addf %177, %181 : vector<2x32xf32>
    %183 = math.tanh %182 : vector<2x32xf32>
    %cst_43 = arith.constant 1.000000e+00 : f32
    %184 = vector.broadcast %cst_43 : f32 to vector<2x32xf32>
    %185 = arith.subf %184, %176 : vector<2x32xf32>
    %186 = arith.mulf %185, %183 : vector<2x32xf32>
    %187 = arith.mulf %176, %156 : vector<2x32xf32>
    %188 = arith.addf %186, %187 : vector<2x32xf32>
    %c0_44 = arith.constant 0 : index
    %c10 = arith.constant 10 : index
    %c0_45 = arith.constant 0 : index
    %189 = vector.load %arg6[%c0_44, %c10, %c0_45] : memref<1x16x32xf32, #tpu.memory_space<vmem>>, vector<1x2x32xf32>
    %190 = vector.shape_cast %189 : vector<1x2x32xf32> to vector<2x32xf32>
    %191 = vector.shape_cast %188 : vector<2x32xf32> to vector<1x2x32xf32>
    tpu.vector_store %arg6[%c0_44, %c10, %c0_45], %191 {strides = array<i32>} : memref<1x16x32xf32, #tpu.memory_space<vmem>>, vector<1x2x32xf32>,
    %cst_46 = arith.constant dense<0.000000e+00> : vector<2x96xf32>
    %192 = tpu.matmul %188, %7, %cst_46 {dimension_numbers = #tpu.dot_dimension_numbers<[1], [0], [0], [1], [0, 0, 1, 1], [], []>} : vector<2x32xf32>, vector<32x96xf32>, vector<2x96xf32> -> vector<2x96xf32>
    %193 = vector.extract_strided_slice %6 {offsets = [12, 0], sizes = [2, 32], strides = [1, 1]} : vector<16x96xf32> to vector<2x32xf32>
    %194 = vector.extract_strided_slice %192 {offsets = [0, 0], sizes = [2, 32], strides = [1, 1]} : vector<2x96xf32> to vector<2x32xf32>
    %195 = arith.addf %193, %194 : vector<2x32xf32>
    %196 = arith.negf %195 : vector<2x32xf32>
    %197 = math.exp %196 : vector<2x32xf32>
    %cst_47 = arith.constant 1.000000e+00 : f32
    %198 = vector.broadcast %cst_47 : f32 to vector<2x32xf32>
    %199 = arith.addf %198, %197 : vector<2x32xf32>
    %200 = arith.divf %198, %199 : vector<2x32xf32>
    %201 = vector.extract_strided_slice %6 {offsets = [12, 32], sizes = [2, 32], strides = [1, 1]} : vector<16x96xf32> to vector<2x32xf32>
    %202 = vector.extract_strided_slice %192 {offsets = [0, 32], sizes = [2, 32], strides = [1, 1]} : vector<2x96xf32> to vector<2x32xf32>
    %203 = arith.addf %201, %202 : vector<2x32xf32>
    %204 = arith.negf %203 : vector<2x32xf32>
    %205 = math.exp %204 : vector<2x32xf32>
    %cst_48 = arith.constant 1.000000e+00 : f32
    %206 = vector.broadcast %cst_48 : f32 to vector<2x32xf32>
    %207 = arith.addf %206, %205 : vector<2x32xf32>
    %208 = arith.divf %206, %207 : vector<2x32xf32>
    %209 = vector.extract_strided_slice %6 {offsets = [12, 64], sizes = [2, 32], strides = [1, 1]} : vector<16x96xf32> to vector<2x32xf32>
    %210 = vector.extract_strided_slice %192 {offsets = [0, 64], sizes = [2, 32], strides = [1, 1]} : vector<2x96xf32> to vector<2x32xf32>
    %211 = vector.broadcast %8 : vector<1x32xf32> to vector<2x32xf32>
    %212 = arith.addf %210, %211 : vector<2x32xf32>
    %213 = arith.mulf %200, %212 : vector<2x32xf32>
    %214 = arith.addf %209, %213 : vector<2x32xf32>
    %215 = math.tanh %214 : vector<2x32xf32>
    %cst_49 = arith.constant 1.000000e+00 : f32
    %216 = vector.broadcast %cst_49 : f32 to vector<2x32xf32>
    %217 = arith.subf %216, %208 : vector<2x32xf32>
    %218 = arith.mulf %217, %215 : vector<2x32xf32>
    %219 = arith.mulf %208, %188 : vector<2x32xf32>
    %220 = arith.addf %218, %219 : vector<2x32xf32>
    %c0_50 = arith.constant 0 : index
    %c12 = arith.constant 12 : index
    %c0_51 = arith.constant 0 : index
    %221 = vector.load %arg6[%c0_50, %c12, %c0_51] : memref<1x16x32xf32, #tpu.memory_space<vmem>>, vector<1x2x32xf32>
    %222 = vector.shape_cast %221 : vector<1x2x32xf32> to vector<2x32xf32>
    %223 = vector.shape_cast %220 : vector<2x32xf32> to vector<1x2x32xf32>
    tpu.vector_store %arg6[%c0_50, %c12, %c0_51], %223 {strides = array<i32>} : memref<1x16x32xf32, #tpu.memory_space<vmem>>, vector<1x2x32xf32>,
    %cst_52 = arith.constant dense<0.000000e+00> : vector<2x96xf32>
    %224 = tpu.matmul %220, %7, %cst_52 {dimension_numbers = #tpu.dot_dimension_numbers<[1], [0], [0], [1], [0, 0, 1, 1], [], []>} : vector<2x32xf32>, vector<32x96xf32>, vector<2x96xf32> -> vector<2x96xf32>
    %225 = vector.extract_strided_slice %6 {offsets = [14, 0], sizes = [2, 32], strides = [1, 1]} : vector<16x96xf32> to vector<2x32xf32>
    %226 = vector.extract_strided_slice %224 {offsets = [0, 0], sizes = [2, 32], strides = [1, 1]} : vector<2x96xf32> to vector<2x32xf32>
    %227 = arith.addf %225, %226 : vector<2x32xf32>
    %228 = arith.negf %227 : vector<2x32xf32>
    %229 = math.exp %228 : vector<2x32xf32>
    %cst_53 = arith.constant 1.000000e+00 : f32
    %230 = vector.broadcast %cst_53 : f32 to vector<2x32xf32>
    %231 = arith.addf %230, %229 : vector<2x32xf32>
    %232 = arith.divf %230, %231 : vector<2x32xf32>
    %233 = vector.extract_strided_slice %6 {offsets = [14, 32], sizes = [2, 32], strides = [1, 1]} : vector<16x96xf32> to vector<2x32xf32>
    %234 = vector.extract_strided_slice %224 {offsets = [0, 32], sizes = [2, 32], strides = [1, 1]} : vector<2x96xf32> to vector<2x32xf32>
    %235 = arith.addf %233, %234 : vector<2x32xf32>
    %236 = arith.negf %235 : vector<2x32xf32>
    %237 = math.exp %236 : vector<2x32xf32>
    %cst_54 = arith.constant 1.000000e+00 : f32
    %238 = vector.broadcast %cst_54 : f32 to vector<2x32xf32>
    %239 = arith.addf %238, %237 : vector<2x32xf32>
    %240 = arith.divf %238, %239 : vector<2x32xf32>
    %241 = vector.extract_strided_slice %6 {offsets = [14, 64], sizes = [2, 32], strides = [1, 1]} : vector<16x96xf32> to vector<2x32xf32>
    %242 = vector.extract_strided_slice %224 {offsets = [0, 64], sizes = [2, 32], strides = [1, 1]} : vector<2x96xf32> to vector<2x32xf32>
    %243 = vector.broadcast %8 : vector<1x32xf32> to vector<2x32xf32>
    %244 = arith.addf %242, %243 : vector<2x32xf32>
    %245 = arith.mulf %232, %244 : vector<2x32xf32>
    %246 = arith.addf %241, %245 : vector<2x32xf32>
    %247 = math.tanh %246 : vector<2x32xf32>
    %cst_55 = arith.constant 1.000000e+00 : f32
    %248 = vector.broadcast %cst_55 : f32 to vector<2x32xf32>
    %249 = arith.subf %248, %240 : vector<2x32xf32>
    %250 = arith.mulf %249, %247 : vector<2x32xf32>
    %251 = arith.mulf %240, %220 : vector<2x32xf32>
    %252 = arith.addf %250, %251 : vector<2x32xf32>
    %c0_56 = arith.constant 0 : index
    %c14 = arith.constant 14 : index
    %c0_57 = arith.constant 0 : index
    %253 = vector.load %arg6[%c0_56, %c14, %c0_57] : memref<1x16x32xf32, #tpu.memory_space<vmem>>, vector<1x2x32xf32>
    %254 = vector.shape_cast %253 : vector<1x2x32xf32> to vector<2x32xf32>
    %255 = vector.shape_cast %252 : vector<2x32xf32> to vector<1x2x32xf32>
    tpu.vector_store %arg6[%c0_56, %c14, %c0_57], %255 {strides = array<i32>} : memref<1x16x32xf32, #tpu.memory_space<vmem>>, vector<1x2x32xf32>,
    return
  }
  func.func @transform_0(%arg0: i32) -> (i32, i32, i32) {
    %c0_i32 = arith.constant 0 : i32
    %c0_i32_0 = arith.constant 0 : i32
    %c0_i32_1 = arith.constant 0 : i32
    return %arg0, %c0_i32, %c0_i32_0 : i32, i32, i32
  }
  func.func @transform_1(%arg0: i32) -> (i32, i32) {
    %c0_i32 = arith.constant 0 : i32
    %c0_i32_0 = arith.constant 0 : i32
    %c0_i32_1 = arith.constant 0 : i32
    return %c0_i32, %c0_i32_0 : i32, i32
  }
  func.func @transform_2(%arg0: i32) -> (i32, i32) {
    %c0_i32 = arith.constant 0 : i32
    %c0_i32_0 = arith.constant 0 : i32
    %c0_i32_1 = arith.constant 0 : i32
    return %c0_i32, %c0_i32_0 : i32, i32
  }
  func.func @transform_3(%arg0: i32) -> (i32, i32) {
    %c0_i32 = arith.constant 0 : i32
    %c0_i32_0 = arith.constant 0 : i32
    %c0_i32_1 = arith.constant 0 : i32
    return %c0_i32, %c0_i32_0 : i32, i32
  }
  func.func @transform_4(%arg0: i32) -> (i32, i32) {
    %c0_i32 = arith.constant 0 : i32
    %c0_i32_0 = arith.constant 0 : i32
    %c0_i32_1 = arith.constant 0 : i32
    return %c0_i32, %c0_i32_0 : i32, i32
  }
  func.func @transform_5(%arg0: i32) -> (i32, i32, i32) {
    %c0_i32 = arith.constant 0 : i32
    %c0_i32_0 = arith.constant 0 : i32
    %c0_i32_1 = arith.constant 0 : i32
    return %arg0, %c0_i32, %c0_i32_0 : i32, i32, i32
  }
}

</mosaic_0001>

<bundles_post_ra>
// kernel: text_encoder_forward.1
= control target key start
LH: loop header
LB: loop body
LE: loop exit
PB: predicated region body
PF: predicated region fallthrough
CT: control target
= control target key end

     0   :  { %vm33_vm0 = vcmask 261120   ;;  %s1141_s7 = smov 64   ;;  %v1142_v19 = vmov 0.0   ;;  %vm1143_vm1 = vmmov 0   ;;  %vm149_vm2 = vcmask 254976   ;;  %s1413_s1 = inlined_call_operand.vmem [shape: f32[32,96], index: 1, kind: input, shape index: {}]   ;;  %s1414_s0 = inlined_call_operand.vmem [shape: f32[1,16,32], index: 0, kind: input, shape index: {}]   ;;  %s1415_s3 = inlined_call_operand.vmem [shape: f32[1,96], index: 3, kind: input, shape index: {}]   ;;  %s1416_s4 = inlined_call_operand.vmem [shape: f32[1,32], index: 4, kind: input, shape index: {}]   ;;  %s1417_s2 = inlined_call_operand.vmem [shape: f32[32,96], index: 2, kind: input, shape index: {}]   ;;  %s1418_s5 = inlined_call_operand.vmem [shape: f32[1,16,32], index: 5, kind: output, shape index: {}]  }
   0x1   :  { %v25_v0 = vld [vmem:[%s1413_s1 + $0x18] sm:$0xff]  ;;  %v24_v1 = vld [vmem:[%s1413_s1 + $0x10] sm:$0xff]  ;;  %v20_v2 = vld [vmem:[%s1414_s0] sm:$0xff]  ;;  %1012 = vmatprep.subr.mxu1 %v1142_v19  ;;  %1020 = vmatprep.mubr.msk.f32.mxu1 %vm1143_vm1, %v1142_v19  ;;  %vm263_vm3 = vcmask 257026   ;;  %vm491_vm4 = vcmask 261126   ;;  %vm377_vm5 = vcmask 259076  }
   0x2   :  { %1001 = vmatprep.subr.mxu0 %v25_v0  ;;  %v23_v3 = vld [vmem:[%s1413_s1 + $0x8] sm:$0xff]  ;;  %1009 = vmatprep.mubr.msk.f32.mxu0 %vm33_vm0, %v20_v2  ;;  %v22_v4 = vld [vmem:[%s1413_s1] sm:$0xff]  ;;  %v1212_v20 = vld [vmem:[%s1417_s2 + $0x18] sm:$0xff] }
   0x3   :  { %1002 = vmatpush3.msra.mxu0 %v25_v0  ;;  %v21_v5 = vld [vmem:[%s1414_s0 + $0x8] sm:$0xff]  ;;  %v941_v6 = vld [vmem:[%s1415_s3] ss:$0 sm:$0xff]  ;;  %v1217_v21 = vld [vmem:[%s1417_s2 + $0x10] sm:$0xff]  ;;  %1013 = vmatpush3.msra.mxu1 %v1212_v20 }
   0x4   :  { %1003 = vmatprep.subr.mxu0 %v24_v1  ;;  %v945_v14 = vld [vmem:[%s1416_s4] ss:$0 sm:$0xff]  ;;  %1014 = vmatprep.subr.mxu1 %v1142_v19  ;;  %v1227_v22 = vld [vmem:[%s1417_s2 + $0x8] sm:$0xff] }
   0x5   :  { %1004 = vmatpush3.msra.mxu0 %v24_v1  ;;  %1015 = vmatpush3.msra.mxu1 %v1217_v21  ;;  %v1236_v23 = vld [vmem:[%s1417_s2] sm:$0xff]  ;;  %s1144_s2 = smov 96  }
   0x6   :  { %1005 = vmatprep.subr.mxu0 %v23_v3  ;;  %1016 = vmatprep.subr.mxu1 %v1142_v19 }
   0x7   :  { %1006 = vmatpush3.msra.mxu0 %v23_v3  ;;  %1017 = vmatpush3.msra.mxu1 %v1227_v22 }
   0x8   :  { %1007 = vmatprep.subr.mxu0 %v22_v4  ;;  %1018 = vmatprep.subr.mxu1 %v1142_v19 }
   0x9   :  { %1008 = vmatpush3.msra.mxu0 %v22_v4  ;;  %1019 = vmatpush3.msra.mxu1 %v1236_v23 }
   0xa   :  { %1010 = vmatmul.mubr.msk.f32.vlgmr.msra.gmra.mxu0 %vm33_vm0, %v21_v5  ;;  %1023 = vmatprep.subr.mxu0 %v1142_v19 }
   0xb   :  { %1024 = vmatpush3.msra.mxu0 %v1212_v20  ;;  %1031 = vmatprep.mubr.msk.f32.mxu0 %vm1143_vm1, %v1142_v19 }
   0xc   :  { %1025 = vmatprep.subr.mxu0 %v1142_v19  ;;  %1034 = vmatprep.subr.mxu1 %v1142_v19 }
   0xd   :  { %1026 = vmatpush3.msra.mxu0 %v1217_v21 }
   0xe   :  { %1027 = vmatprep.subr.mxu0 %v1142_v19 }
   0xf   :  { %1028 = vmatpush3.msra.mxu0 %v1227_v22 }
  0x10   :  { %1029 = vmatprep.subr.mxu0 %v1142_v19 }
  0x11   :  { %1030 = vmatpush3.msra.mxu0 %v1236_v23 }
  0x12   :  { %1045 = vmatprep.subr.mxu0 %v1142_v19 }
  0xca   :  { %v1011_v7 = vpop.f32.mrf.mxu0 }
  0xcb   :  { %v1198_v8 = vadd.f32 %v1011_v7, %v941_v6 }
  0xcc   :  { %v106_v9 = vpop.f32.mrf.mxu0 }
  0xcd   :  { %v1200_v10 = vadd.f32 %v941_v6, %v106_v9 }
  0xcf   :  { %v944_v11 = vmul.f32 -1.442695, %v1200_v10 }
  0xd1   :  { %1093 = vpow2.f32 %v944_v11 }
  0xde   :  { %v1094_v12 = vpop.eup %1093 }
  0xdf   :  { %v123_v13 = vadd.f32 1.0, %v1094_v12 }
  0xe1   :  { %1095 = vrcp.f32 %v123_v13 }
  0xee   :  { %v1096_v15 = vpop.eup %1095 }
  0xef   :  { %v132_v16 = vmul.f32 %v1096_v15, %v945_v14  ;;  %v139_v25 = vsub.f32 1.0, %v1096_v15 }
  0xf1   :  { %134 = vrot.lane.b32.xlu0 %v132_v16, %s1141_s7 }
 0x163   :  { %v135_v17 = vpop.permute.xlu0 %134 }
 0x164   :  { %v137_v18 = vadd.f32 %v135_v17, %v1200_v10 }
 0x166   :  { %1097 = vtanh.f32 %v137_v18 }
 0x173   :  { %v1098_v24 = vpop.eup %1097 }
 0x174   :  { %141 = vrot.lane.b32.xlu0 %v1098_v24, %s1144_s2 }
 0x1e6   :  { %v142_v26 = vpop.permute.xlu0 %141 }
 0x1e7   :  { %v144_v27 = vmul.f32 %v142_v26, %v139_v25 }
 0x1e9   :  { %146 = vrot.lane.b32.xlu1 %v144_v27, %s1144_s2  ;;  %v255_v45 = vrot.slane %v144_v27, 6 }
 0x1ed   :  { %233 = vrot.lane.b32.xlu1 %v945_v14, %s1141_s7 }
 0x25b   :  { %v147_v28 = vpop.permute.xlu1 %146 }
 0x25c   :  { %150 = vst.msk [vmem:[%s1418_s5] sm:$0x3] %vm149_vm2, %v147_v28  ;;  %1021 = vmatmul.mubr.msk.f32.vlgmr.msra.gmra.mxu1 %vm33_vm0, %v147_v28 }
 0x25d   :  { %1035 = vmatpush3.msra.mxu1 %v1212_v20  ;;  %1042 = vmatprep.mubr.msk.f32.mxu1 %vm1143_vm1, %v1142_v19 }
 0x25e   :  { %1036 = vmatprep.subr.mxu1 %v1142_v19 }
 0x25f   :  { %1037 = vmatpush3.msra.mxu1 %v1217_v21  ;;  %v1268_v29 = vpop.permute.xlu1 %233 }
 0x260   :  { %1038 = vmatprep.subr.mxu1 %v1142_v19 }
 0x261   :  { %1039 = vmatpush3.msra.mxu1 %v1227_v22 }
 0x262   :  { %1040 = vmatprep.subr.mxu1 %v1142_v19 }
 0x263   :  { %1041 = vmatpush3.msra.mxu1 %v1236_v23 }
 0x264   :  { %1056 = vmatprep.subr.mxu1 %v1142_v19 }
 0x31c   :  { %v219_v30 = vpop.f32.mrf.mxu1 }
 0x31d   :  { %v236_v31 = vadd.f32 %v1268_v29, %v219_v30  ;;  %v224_v34 = vrot.slane %v219_v30, 6 }
 0x31e   :  { %v1022_v32 = vpop.f32.mrf.mxu1 }
 0x31f   :  { %v238_v33 = vrot.slane %v236_v31, 6  ;;  %v226_v35 = vadd.f32 %v224_v34, %v1200_v10 }
 0x321   :  { %239 = vrot.lane.b32.xlu0 %v238_v33, %s1141_s7  ;;  %v947_v36 = vmul.f32 -1.442695, %v226_v35 }
 0x323   :  { %1099 = vpow2.f32 %v947_v36 }
 0x330   :  { %v1100_v37 = vpop.eup %1099 }
 0x331   :  { %v230_v38 = vadd.f32 1.0, %v1100_v37 }
 0x333   :  { %1101 = vrcp.f32 %v230_v38 }
 0x340   :  { %v1102_v39 = vpop.eup %1101 }
 0x341   :  { %v249_v46 = vsub.f32 1.0, %v1102_v39  ;;  %v257_v49 = vmul.f32 %v1102_v39, %v255_v45 }
 0x393   :  { %v240_v40 = vpop.permute.xlu0 %239 }
 0x394   :  { %v242_v41 = vmul.f32 %v1102_v39, %v240_v40 }
 0x396   :  { %244 = vrot.lane.b32.xlu1 %v242_v41, %s1141_s7 }
 0x408   :  { %v245_v42 = vpop.permute.xlu1 %244 }
 0x409   :  { %v247_v43 = vadd.f32 %v245_v42, %v1200_v10 }
 0x40b   :  { %1103 = vtanh.f32 %v247_v43 }
 0x418   :  { %v1104_v44 = vpop.eup %1103 }
 0x419   :  { %251 = vrot.lane.b32.xlu0 %v1104_v44, %s1144_s2 }
 0x48b   :  { %v252_v47 = vpop.permute.xlu0 %251 }
 0x48c   :  { %v254_v48 = vmul.f32 %v252_v47, %v249_v46 }
 0x48e   :  { %v1276_v50 = vadd.f32 %v257_v49, %v254_v48 }
 0x490   :  { %v265_v51 = vrot.slane %v1276_v50, 2  ;;  %v369_v5 = vrot.slane %v1276_v50, 6 }
 0x492   :  { %266 = vrot.lane.b32.xlu1 %v265_v51, %s1144_s2 }
 0x504   :  { %v267_v52 = vpop.permute.xlu1 %266 }
 0x505   :  { %1032 = vmatmul.mubr.msk.f32.vlgmr.msra.gmra.mxu0 %vm33_vm0, %v267_v52 }
 0x506   :  { %1046 = vmatpush3.msra.mxu0 %v1212_v20  ;;  %1053 = vmatprep.mubr.msk.f32.mxu0 %vm1143_vm1, %v1142_v19 }
 0x507   :  { %1047 = vmatprep.subr.mxu0 %v1142_v19 }
 0x508   :  { %1048 = vmatpush3.msra.mxu0 %v1217_v21 }
 0x509   :  { %1049 = vmatprep.subr.mxu0 %v1142_v19 }
 0x50a   :  { %1050 = vmatpush3.msra.mxu0 %v1227_v22 }
 0x50b   :  { %1051 = vmatprep.subr.mxu0 %v1142_v19 }
 0x50c   :  { %1052 = vmatpush3.msra.mxu0 %v1236_v23 }
 0x50d   :  { %1067 = vmatprep.subr.mxu0 %v1142_v19 }
 0x5c5   :  { %v336_v53 = vpop.f32.mrf.mxu0 }
 0x5c6   :  { %v350_v54 = vadd.f32 %v336_v53, %v1268_v29  ;;  %v341_v57 = vrot.slane %v336_v53, 4 }
 0x5c7   :  { %v1033_v55 = vpop.f32.mrf.mxu0 }
 0x5c8   :  { %v352_v56 = vrot.slane %v350_v54, 4  ;;  %v343_v58 = vadd.f32 %v341_v57, %v1200_v10 }
 0x5ca   :  { %353 = vrot.lane.b32.xlu0 %v352_v56, %s1141_s7  ;;  %v949_v59 = vmul.f32 -1.442695, %v343_v58 }
 0x5cc   :  { %1105 = vpow2.f32 %v949_v59 }
 0x5d9   :  { %v1106_v60 = vpop.eup %1105 }
 0x5da   :  { %v347_v61 = vadd.f32 1.0, %v1106_v60 }
 0x5dc   :  { %1107 = vrcp.f32 %v347_v61 }
 0x5e9   :  { %v1108_v62 = vpop.eup %1107 }
 0x5ea   :  { %v363_v4 = vsub.f32 1.0, %v1108_v62  ;;  %v371_v7 = vmul.f32 %v1108_v62, %v369_v5 }
 0x63c   :  { %v354_v63 = vpop.permute.xlu0 %353 }
 0x63d   :  { %v356_v0 = vmul.f32 %v1108_v62, %v354_v63 }
 0x63f   :  { %358 = vrot.lane.b32.xlu1 %v356_v0, %s1141_s7 }
 0x6b1   :  { %v359_v1 = vpop.permute.xlu1 %358 }
 0x6b2   :  { %v361_v2 = vadd.f32 %v359_v1, %v1200_v10 }
 0x6b4   :  { %1109 = vtanh.f32 %v361_v2 }
 0x6c1   :  { %v1110_v3 = vpop.eup %1109 }
 0x6c2   :  { %365 = vrot.lane.b32.xlu0 %v1110_v3, %s1144_s2 }
 0x734   :  { %v366_v6 = vpop.permute.xlu0 %365 }
 0x735   :  { %v368_v9 = vmul.f32 %v366_v6, %v363_v4 }
 0x737   :  { %v1298_v11 = vadd.f32 %v371_v7, %v368_v9 }
 0x739   :  { %v379_v12 = vrot.slane %v1298_v11, 4  ;;  %v483_v36 = vrot.slane %v1298_v11, 6 }
 0x73b   :  { %380 = vrot.lane.b32.xlu1 %v379_v12, %s1144_s2 }
 0x7ad   :  { %v381_v13 = vpop.permute.xlu1 %380 }
 0x7ae   :  { %1043 = vmatmul.mubr.msk.f32.vlgmr.msra.gmra.mxu1 %vm33_vm0, %v381_v13 }
 0x7af   :  { %1057 = vmatpush3.msra.mxu1 %v1212_v20  ;;  %1064 = vmatprep.mubr.msk.f32.mxu1 %vm1143_vm1, %v1142_v19 }
 0x7b0   :  { %1058 = vmatprep.subr.mxu1 %v1142_v19 }
 0x7b1   :  { %1059 = vmatpush3.msra.mxu1 %v1217_v21 }
 0x7b2   :  { %1060 = vmatprep.subr.mxu1 %v1142_v19 }
 0x7b3   :  { %1061 = vmatpush3.msra.mxu1 %v1227_v22 }
 0x7b4   :  { %1062 = vmatprep.subr.mxu1 %v1142_v19 }
 0x7b5   :  { %1063 = vmatpush3.msra.mxu1 %v1236_v23 }
 0x7b6   :  { %1078 = vmatprep.subr.mxu1 %v1142_v19 }
 0x86e   :  { %v450_v14 = vpop.f32.mrf.mxu1 }
 0x86f   :  { %v464_v15 = vadd.f32 %v450_v14, %v1268_v29  ;;  %v455_v18 = vrot.slane %v450_v14, 2 }
 0x870   :  { %v1044_v16 = vpop.f32.mrf.mxu1 }
 0x871   :  { %v466_v17 = vrot.slane %v464_v15, 2  ;;  %v457_v24 = vadd.f32 %v455_v18, %v1200_v10 }
 0x873   :  { %467 = vrot.lane.b32.xlu0 %v466_v17, %s1141_s7  ;;  %v951_v25 = vmul.f32 -1.442695, %v457_v24 }
 0x875   :  { %1111 = vpow2.f32 %v951_v25 }
 0x882   :  { %v1112_v26 = vpop.eup %1111 }
 0x883   :  { %v461_v27 = vadd.f32 1.0, %v1112_v26 }
 0x885   :  { %1113 = vrcp.f32 %v461_v27 }
 0x892   :  { %v1114_v28 = vpop.eup %1113 }
 0x893   :  { %v477_v35 = vsub.f32 1.0, %v1114_v28  ;;  %v485_v38 = vmul.f32 %v1114_v28, %v483_v36 }
 0x8e5   :  { %v468_v30 = vpop.permute.xlu0 %467 }
 0x8e6   :  { %v470_v31 = vmul.f32 %v1114_v28, %v468_v30 }
 0x8e8   :  { %472 = vrot.lane.b32.xlu1 %v470_v31, %s1141_s7 }
 0x95a   :  { %v473_v32 = vpop.permute.xlu1 %472 }
 0x95b   :  { %v475_v33 = vadd.f32 %v473_v32, %v1200_v10 }
 0x95d   :  { %1115 = vtanh.f32 %v475_v33 }
 0x96a   :  { %v1116_v34 = vpop.eup %1115 }
 0x96b   :  { %479 = vrot.lane.b32.xlu0 %v1116_v34, %s1144_s2 }
 0x9dd   :  { %v480_v37 = vpop.permute.xlu0 %479 }
 0x9de   :  { %v482_v39 = vmul.f32 %v480_v37, %v477_v35 }
 0x9e0   :  { %v1320_v40 = vadd.f32 %v485_v38, %v482_v39 }
 0x9e2   :  { %v493_v41 = vrot.slane %v1320_v40, 6 }
 0x9e4   :  { %494 = vrot.lane.b32.xlu1 %v493_v41, %s1144_s2 }
 0xa56   :  { %v495_v42 = vpop.permute.xlu1 %494 }
 0xa57   :  { %1054 = vmatmul.mubr.msk.f32.vlgmr.msra.gmra.mxu0 %vm33_vm0, %v495_v42 }
 0xa58   :  { %1068 = vmatpush3.msra.mxu0 %v1212_v20  ;;  %1075 = vmatprep.mubr.msk.f32.mxu0 %vm1143_vm1, %v1142_v19 }
 0xa59   :  { %1069 = vmatprep.subr.mxu0 %v1142_v19 }
 0xa5a   :  { %1070 = vmatpush3.msra.mxu0 %v1217_v21 }
 0xa5b   :  { %1071 = vmatprep.subr.mxu0 %v1142_v19 }
 0xa5c   :  { %1072 = vmatpush3.msra.mxu0 %v1227_v22 }
 0xa5d   :  { %1073 = vmatprep.subr.mxu0 %v1142_v19 }
 0xa5e   :  { %1074 = vmatpush3.msra.mxu0 %v1236_v23 }
 0xb17   :  { %v564_v10 = vpop.f32.mrf.mxu0 }
 0xb18   :  { %v575_v43 = vadd.f32 %v564_v10, %v1268_v29  ;;  %v568_v45 = vadd.f32 %v564_v10, %v1198_v8 }
 0xb19   :  { %v1055_v44 = vpop.f32.mrf.mxu0 }
 0xb1a   :  { %577 = vrot.lane.b32.xlu0 %v575_v43, %s1141_s7  ;;  %v953_v46 = vmul.f32 -1.442695, %v568_v45 }
 0xb1c   :  { %1117 = vpow2.f32 %v953_v46 }
 0xb29   :  { %v1118_v47 = vpop.eup %1117 }
 0xb2a   :  { %v572_v48 = vadd.f32 1.0, %v1118_v47 }
 0xb2c   :  { %1119 = vrcp.f32 %v572_v48 }
 0xb39   :  { %v1120_v49 = vpop.eup %1119 }
 0xb3a   :  { %v587_v56 = vsub.f32 1.0, %v1120_v49  ;;  %v594_v58 = vmul.f32 %v1120_v49, %v493_v41 }
 0xb8c   :  { %v578_v51 = vpop.permute.xlu0 %577 }
 0xb8d   :  { %v580_v52 = vmul.f32 %v1120_v49, %v578_v51 }
 0xb8f   :  { %582 = vrot.lane.b32.xlu1 %v580_v52, %s1141_s7 }
 0xc01   :  { %v583_v53 = vpop.permute.xlu1 %582 }
 0xc02   :  { %v585_v54 = vadd.f32 %v583_v53, %v1198_v8 }
 0xc04   :  { %1121 = vtanh.f32 %v585_v54 }
 0xc11   :  { %v1122_v55 = vpop.eup %1121 }
 0xc12   :  { %589 = vrot.lane.b32.xlu0 %v1122_v55, %s1144_s2 }
 0xc84   :  { %v590_v57 = vpop.permute.xlu0 %589 }
 0xc85   :  { %v592_v59 = vmul.f32 %v590_v57, %v587_v56 }
 0xc87   :  { %v595_v60 = vadd.f32 %v594_v58, %v592_v59 }
 0xc89   :  { %597 = vrot.lane.b32.xlu1 %v595_v60, %s1144_s2  ;;  %v702_v9 = vrot.slane %v595_v60, 6 }
 0xcfb   :  { %v598_v61 = vpop.permute.xlu1 %597 }
 0xcfc   :  { %600 = vst.msk [vmem:[%s1418_s5 + $0x8] sm:$0x3] %vm149_vm2, %v598_v61  ;;  %1065 = vmatmul.mubr.msk.f32.vlgmr.msra.gmra.mxu1 %vm33_vm0, %v598_v61 }
 0xcfd   :  { %1079 = vmatpush3.msra.mxu1 %v1212_v20  ;;  %1086 = vmatprep.mubr.msk.f32.mxu1 %vm1143_vm1, %v1142_v19 }
 0xcfe   :  { %1080 = vmatprep.subr.mxu1 %v1142_v19 }
 0xcff   :  { %1081 = vmatpush3.msra.mxu1 %v1217_v21 }
 0xd00   :  { %1082 = vmatprep.subr.mxu1 %v1142_v19 }
 0xd01   :  { %1083 = vmatpush3.msra.mxu1 %v1227_v22 }
 0xd02   :  { %1084 = vmatprep.subr.mxu1 %v1142_v19 }
 0xd03   :  { %1085 = vmatpush3.msra.mxu1 %v1236_v23 }
 0xdbc   :  { %v669_v62 = vpop.f32.mrf.mxu1 }
 0xdbd   :  { %v683_v63 = vadd.f32 %v669_v62, %v1268_v29  ;;  %v674_v1 = vrot.slane %v669_v62, 6 }
 0xdbe   :  { %v1066_v0 = vpop.f32.mrf.mxu1 }
 0xdbf   :  { %v685_v20 = vrot.slane %v683_v63, 6  ;;  %v676_v2 = vadd.f32 %v674_v1, %v1198_v8 }
 0xdc1   :  { %686 = vrot.lane.b32.xlu0 %v685_v20, %s1141_s7  ;;  %v955_v3 = vmul.f32 -1.442695, %v676_v2 }
 0xdc3   :  { %1123 = vpow2.f32 %v955_v3 }
 0xdd0   :  { %v1124_v21 = vpop.eup %1123 }
 0xdd1   :  { %v680_v4 = vadd.f32 1.0, %v1124_v21 }
 0xdd3   :  { %1125 = vrcp.f32 %v680_v4 }
 0xde0   :  { %v1126_v22 = vpop.eup %1125 }
 0xde1   :  { %v696_v12 = vsub.f32 1.0, %v1126_v22  ;;  %v704_v15 = vmul.f32 %v1126_v22, %v702_v9 }
 0xe33   :  { %v687_v5 = vpop.permute.xlu0 %686 }
 0xe34   :  { %v689_v19 = vmul.f32 %v1126_v22, %v687_v5 }
 0xe36   :  { %691 = vrot.lane.b32.xlu1 %v689_v19, %s1141_s7 }
 0xea8   :  { %v692_v23 = vpop.permute.xlu1 %691 }
 0xea9   :  { %v694_v6 = vadd.f32 %v692_v23, %v1198_v8 }
 0xeab   :  { %1127 = vtanh.f32 %v694_v6 }
 0xeb8   :  { %v1128_v7 = vpop.eup %1127 }
 0xeb9   :  { %698 = vrot.lane.b32.xlu0 %v1128_v7, %s1144_s2 }
 0xf2b   :  { %v699_v13 = vpop.permute.xlu0 %698 }
 0xf2c   :  { %v701_v14 = vmul.f32 %v699_v13, %v696_v12 }
 0xf2e   :  { %v1361_v16 = vadd.f32 %v704_v15, %v701_v14 }
 0xf30   :  { %v711_v17 = vrot.slane %v1361_v16, 2  ;;  %v815_v42 = vrot.slane %v1361_v16, 6 }
 0xf32   :  { %712 = vrot.lane.b32.xlu1 %v711_v17, %s1144_s2 }
 0xfa4   :  { %v713_v18 = vpop.permute.xlu1 %712 }
 0xfa5   :  { %1076 = vmatmul.mubr.msk.f32.vlgmr.msra.gmra.mxu0 %vm33_vm0, %v713_v18 }
0x1065   :  { %v782_v24 = vpop.f32.mrf.mxu0 }
0x1066   :  { %v796_v25 = vadd.f32 %v782_v24, %v1268_v29  ;;  %v787_v28 = vrot.slane %v782_v24, 4 }
0x1067   :  { %v1077_v26 = vpop.f32.mrf.mxu0 }
0x1068   :  { %v798_v27 = vrot.slane %v796_v25, 4  ;;  %v789_v30 = vadd.f32 %v787_v28, %v1198_v8 }
0x106a   :  { %799 = vrot.lane.b32.xlu0 %v798_v27, %s1141_s7  ;;  %v957_v31 = vmul.f32 -1.442695, %v789_v30 }
0x106c   :  { %1129 = vpow2.f32 %v957_v31 }
0x1079   :  { %v1130_v32 = vpop.eup %1129 }
0x107a   :  { %v793_v33 = vadd.f32 1.0, %v1130_v32 }
0x107c   :  { %1131 = vrcp.f32 %v793_v33 }
0x1089   :  { %v1132_v34 = vpop.eup %1131 }
0x108a   :  { %v809_v41 = vsub.f32 1.0, %v1132_v34  ;;  %v817_v43 = vmul.f32 %v1132_v34, %v815_v42 }
0x10dc   :  { %v800_v35 = vpop.permute.xlu0 %799 }
0x10dd   :  { %v802_v36 = vmul.f32 %v1132_v34, %v800_v35 }
0x10df   :  { %804 = vrot.lane.b32.xlu1 %v802_v36, %s1141_s7 }
0x1151   :  { %v805_v37 = vpop.permute.xlu1 %804 }
0x1152   :  { %v807_v38 = vadd.f32 %v805_v37, %v1198_v8 }
0x1154   :  { %1133 = vtanh.f32 %v807_v38 }
0x1161   :  { %v1134_v39 = vpop.eup %1133 }
0x1162   :  { %811 = vrot.lane.b32.xlu0 %v1134_v39, %s1144_s2 }
0x11d4   :  { %v812_v10 = vpop.permute.xlu0 %811 }
0x11d5   :  { %v814_v44 = vmul.f32 %v812_v10, %v809_v41 }
0x11d7   :  { %v818_v45 = vadd.f32 %v817_v43, %v814_v44 }
0x11d9   :  { %v824_v46 = vrot.slane %v818_v45, 4  ;;  %v928_v0 = vrot.slane %v818_v45, 6 }
0x11db   :  { %825 = vrot.lane.b32.xlu1 %v824_v46, %s1144_s2 }
0x124d   :  { %v826_v47 = vpop.permute.xlu1 %825 }
0x124e   :  { %1087 = vmatmul.mubr.msk.f32.vlgmr.msra.gmra.mxu1 %vm33_vm0, %v826_v47 }
0x130e   :  { %v895_v48 = vpop.f32.mrf.mxu1 }
0x130f   :  { %v909_v49 = vadd.f32 %v895_v48, %v1268_v29  ;;  %v900_v53 = vrot.slane %v895_v48, 2 }
0x1310   :  { %v1088_v51 = vpop.f32.mrf.mxu1 }
0x1311   :  { %v911_v52 = vrot.slane %v909_v49, 2  ;;  %v902_v54 = vadd.f32 %v900_v53, %v1198_v8 }
0x1313   :  { %912 = vrot.lane.b32.xlu0 %v911_v52, %s1141_s7  ;;  %v959_v55 = vmul.f32 -1.442695, %v902_v54 }
0x1315   :  { %1135 = vpow2.f32 %v959_v55 }
0x1322   :  { %v1136_v56 = vpop.eup %1135 }
0x1323   :  { %v906_v57 = vadd.f32 1.0, %v1136_v56 }
0x1325   :  { %1137 = vrcp.f32 %v906_v57 }
0x1332   :  { %v1138_v58 = vpop.eup %1137 }
0x1333   :  { %v930_v1 = vmul.f32 %v1138_v58, %v928_v0 }
0x1385   :  { %v913_v59 = vpop.permute.xlu0 %912 }
0x1386   :  { %v915_v60 = vmul.f32 %v1138_v58, %v913_v59 }
0x1388   :  { %917 = vrot.lane.b32.xlu1 %v915_v60, %s1141_s7 }
0x138c   :  { %260 = vrot.lane.b32.xlu1 %v1276_v50, %s1144_s2 }
0x1390   :  { %488 = vrot.lane.b32.xlu1 %v1320_v40, %s1144_s2  ;;  %v922_v40 = vsub.f32 1.0, %v1138_v58 }
0x1394   :  { %820 = vrot.lane.b32.xlu1 %v818_v45, %s1144_s2 }
0x13fa   :  { %v918_v29 = vpop.permute.xlu1 %917 }
0x13fb   :  { %v920_v61 = vadd.f32 %v918_v29, %v1198_v8 }
0x13fd   :  { %1139 = vtanh.f32 %v920_v61 }
0x13fe   :  { %v261_v62 = vpop.permute.xlu1 %260 }
0x13ff   :  { %264 = vst.msk [vmem:[%s1418_s5] sm:$0xc] %vm263_vm3, %v261_v62 }
0x1402   :  { %v489_v63 = vpop.permute.xlu1 %488 }
0x1403   :  { %492 = vst.msk [vmem:[%s1418_s5] sm:$0xc0] %vm491_vm4, %v489_v63 }
0x1406   :  { %v821_v50 = vpop.permute.xlu1 %820 }
0x1407   :  { %823 = vst.msk [vmem:[%s1418_s5 + $0x8] sm:$0x30] %vm377_vm5, %v821_v50 }
0x140a   :  { %v1140_v8 = vpop.eup %1139 }
0x140b   :  { %924 = vrot.lane.b32.xlu0 %v1140_v8, %s1144_s2 }
0x140f   :  { %374 = vrot.lane.b32.xlu0 %v1298_v11, %s1144_s2 }
0x1413   :  { %707 = vrot.lane.b32.xlu0 %v1361_v16, %s1144_s2 }
0x147d   :  { %v925_v20 = vpop.permute.xlu0 %924 }
0x147e   :  { %v927_v2 = vmul.f32 %v925_v20, %v922_v40 }
0x1480   :  { %v931_v3 = vadd.f32 %v930_v1, %v927_v2 }
0x1481   :  { %v375_v21 = vpop.permute.xlu0 %374 }
0x1482   :  { %378 = vst.msk [vmem:[%s1418_s5] sm:$0x30] %vm377_vm5, %v375_v21  ;;  %933 = vrot.lane.b32.xlu0 %v931_v3, %s1144_s2 }
0x1485   :  { %v708_v4 = vpop.permute.xlu0 %707 }
0x1486   :  { %710 = vst.msk [vmem:[%s1418_s5 + $0x8] sm:$0xc] %vm263_vm3, %v708_v4 }
0x14f4   :  { %v934_v11 = vpop.permute.xlu0 %933 }
0x14f5   :  { %936 = vst.msk [vmem:[%s1418_s5 + $0x8] sm:$0xc0] %vm491_vm4, %v934_v11 }

</bundles_post_ra>
